<compile_context>
chip_gen: v6e
topology: v6e:2x2x1
jax: 0.10.0
libtpu: 0.0.40
codegen_flags: <defaults>
</compile_context>

<pallas_src>
import numpy as np
import jax
import jax.numpy as jnp
from jax.experimental import pallas as pl
from jax.experimental.pallas import tpu as pltpu


def _round_up(x, m):
    return (x + m - 1) // m * m


def _bucket_nodes(n):
    """Bucket the (host-varying) unique-node count to a few static sizes so
    jit does not retrace per batch (pow2 up to 512, then multiples of 512)."""
    n = max(int(n), 1)
    if n <= 512:
        return max(32, pl.next_power_of_2(n))
    return _round_up(n, 512)


def _node_tiling(n):
    """Pick (tile_rows, padded_rows): tile is a multiple of 16 (bf16 packing),
    capped at 1024 rows, with >=2 grid steps so both v7x TCs are used."""
    n_b = _bucket_nodes(n)
    n_tiles = max(pl.cdiv(n_b, 1024), 2)
    tn = _round_up(pl.cdiv(n_b, n_tiles), 16)
    n_pad = _round_up(n_b, tn)
    return tn, n_pad


# ----------------------------- Pallas kernel ------------------------------ #
def sage_layer_kernel(h_ref, neigh_ref, w_ref, b_ref, o_ref):
    # MeanAggregator: 1/K is folded into the neighbor half of w_ref on the
    # host, so a plain sum over the leading K axis suffices.  Sum in f32
    # (safe on v5e too), cast once for the fused bf16 matmul operand.
    neigh_sum = jnp.sum(neigh_ref[...].astype(jnp.float32), axis=0)      # [TN, Fn]

    # Linear(concat([h_prev, mean], -1)) realized as ONE MXU matmul against
    # the fused [Fh+Fn, Opad] weight (one K-slab instead of two shallow dots).
    x_cat = jnp.concatenate(
        [h_ref[...], neigh_sum.astype(jnp.bfloat16)], axis=-1)           # [TN, Fh+Fn]
    acc = jnp.dot(x_cat, w_ref[...], preferred_element_type=jnp.float32)  # [TN, Opad]
    acc = acc + b_ref[...]                                               # bias (f32)
    o_ref[...] = jnp.maximum(acc, 0.0).astype(o_ref.dtype)               # ReLU -> bf16


@jax.jit
def sage_layer(h_prev, neigh_knf, w_self, w_neigh, b):
    """One GraphSAGE layer: relu(Linear(cat([h, mean_K(neigh)], -1))).

    h_prev:    [n_rows, Fh]  possibly row/lane padded from the previous layer
               (padded lanes are exact zeros).
    neigh_knf: [K, n, Fn]    neighbor features, already in K-major layout.
    Returns the padded [n_pad, o_pad] bf16 activation (crop happens once at
    the very end of the forward pass).
    """
    k, n, f_n = neigh_knf.shape
    f_h = h_prev.shape[1]
    f_logical, o = w_self.shape

    tn, n_pad = _node_tiling(n)
    o_pad = _round_up(o, 128)          # lane-dense output -> unmasked stores

    # Fused weight [Fh+Fn, o_pad]: pad W_self rows to match a lane-padded
    # h_prev (its extra lanes are zeros, so zero weight rows are exact), fold
    # the mean's 1/K into W_neigh, zero-pad output lanes, cast to bf16.
    w_s = w_self
    if f_h != f_logical:
        w_s = jnp.pad(w_s, ((0, f_h - f_logical), (0, 0)))
    w_cat = jnp.concatenate([w_s, w_neigh * (1.0 / k)], axis=0)
    b_p = b
    if o_pad != o:
        w_cat = jnp.pad(w_cat, ((0, 0), (0, o_pad - o)))
        b_p = jnp.pad(b_p, ((0, 0), (0, o_pad - o)))
    w_cat = w_cat.astype(jnp.bfloat16)
    b_p = b_p.astype(jnp.float32)

    # Activations: bf16 matmul operands, row-padded to n_pad.
    h_p = h_prev.astype(jnp.bfloat16)
    if h_p.shape[0] != n_pad:
        h_p = jnp.pad(h_p, ((0, n_pad - h_p.shape[0]), (0, 0)))
    neigh_p = neigh_knf.astype(jnp.bfloat16)
    if n != n_pad:
        neigh_p = jnp.pad(neigh_p, ((0, 0), (0, n_pad - n), (0, 0)))

    out = pl.pallas_call(
        sage_layer_kernel,
        out_shape=jax.ShapeDtypeStruct((n_pad, o_pad), jnp.bfloat16),
        grid=(n_pad // tn,),
        in_specs=[
            pl.BlockSpec((tn, f_h), lambda i: (i, 0)),           # h tile
            pl.BlockSpec((k, tn, f_n), lambda i: (0, i, 0)),     # neighbor tile
            pl.BlockSpec((f_h + f_n, o_pad), lambda i: (0, 0)),  # fused W (resident)
            pl.BlockSpec((1, o_pad), lambda i: (0, 0)),          # bias (resident)
        ],
        out_specs=pl.BlockSpec((tn, o_pad), lambda i: (i, 0)),
        compiler_params=pltpu.CompilerParams(
            dimension_semantics=("parallel",),
            vmem_limit_bytes=32 * 1024 * 1024,   # conservative even for v7x's 64 MiB
        ),
    )(h_p, neigh_p, w_cat, b_p)
    return out


# --------------------------- synthetic dataloader -------------------------- #
class SyntheticLoader:
    """Deterministic stand-in for the GraphSAGE dataloader.

    The feature table is stored in bf16 so neighbor features are gathered
    directly in the kernel's operand dtype/layout (no extra device passes)."""

    def __init__(self, key, n_nodes, n_feats, max_neighbors):
        kf, ka = jax.random.split(key)
        self.n_feats = n_feats
        self.feats = jax.random.normal(
            kf, (n_nodes, n_feats), dtype=jnp.float32).astype(jnp.bfloat16)
        self.adj = np.array(
            jax.random.randint(ka, (n_nodes, max_neighbors), 0, n_nodes))

    def neighbors(self, nodes, k):
        return self.adj[np.asarray(nodes)][:, :k]             # [U, k] node ids

    def get_feats(self, ids):
        """Gather features for an arbitrarily-shaped id array (shape + [F])."""
        return self.feats[jnp.asarray(np.asarray(ids))]


# ------------------------------ parameters -------------------------------- #
def init_params(key, layer_sizes, concat=True):
    """nn.Linear(size * 2 if concat else size, layer_sizes[i+1]) weights."""
    params = []
    for i, size in enumerate(layer_sizes[:-1]):
        in_f = size * (2 if concat else 1)
        out_f = layer_sizes[i + 1]
        key, kw, kb = jax.random.split(key, 3)
        bound = 1.0 / float(np.sqrt(in_f))
        w = jax.random.uniform(kw, (out_f, in_f), minval=-bound, maxval=bound,
                               dtype=jnp.float32)
        b = jax.random.uniform(kb, (1, out_f), minval=-bound, maxval=bound,
                               dtype=jnp.float32)
        # split concat weight into self / neighbor halves, transpose to [in, out]
        w_self = jnp.transpose(w[:, :size])
        w_neigh = jnp.transpose(w[:, size:])
        params.append((w_self, w_neigh, b))
    return params


# ------------------------------- forward ----------------------------------- #
def _forward_impl(params, loader, n_neighbors, x, nodes, limit=9999):
    # node dedup done on the host, exactly as np.unique in the reference
    nodes_u, unique_idx, unique_reverse = np.unique(
        np.asarray(nodes), return_index=True, return_inverse=True)
    h_prev = jnp.asarray(x)[jnp.asarray(unique_idx)]           # [U, F]
    h = h_prev
    o_logical = h_prev.shape[-1]
    for i, (w_self, w_neigh, b) in enumerate(params[:limit]):
        k_i = n_neighbors[i]
        neighs = loader.neighbors(nodes_u, k_i)                # [U, K] host ids
        if i == 1:
            # recursive 1-layer embedding of the neighbors (as in the reference);
            # flatten in K-major order so the result lands directly in [K, U, F].
            # TODO(synk): fuse this layer-0 embedding and layer-1 into one device
            # program; loader.neighbors/np.unique are host ops forcing a sync.
            flat = neighs.T.reshape(-1)
            nf = _forward_impl(params, loader, n_neighbors,
                               loader.get_feats(flat), flat, limit=1)
            neigh_knf = nf.reshape(k_i, len(nodes_u), -1)      # [K, U, hidden]
        else:
            # gather with the transposed index array -> [K, U, F] bf16 directly
            neigh_knf = loader.get_feats(neighs.T)
        h = sage_layer(h_prev, neigh_knf, w_self, w_neigh, b)  # padded [n_pad, o_pad]
        h_prev = h
        o_logical = w_self.shape[1]
    # single crop at the very end, then scatter back to the original node order
    h = h[:len(nodes_u), :o_logical]
    return h[jnp.asarray(unique_reverse)]


def graphsage_forward(params, loader, n_neighbors, x, nodes, limit=9999):
    return _forward_impl(params, loader, n_neighbors, x, nodes, limit).astype(
        jnp.float32)


# --------------------------- pure-JAX reference ---------------------------- #
def _reference_forward(params, loader, n_neighbors, x, nodes, limit=9999):
    nodes_u, unique_idx, unique_reverse = np.unique(
        np.asarray(nodes), return_index=True, return_inverse=True)
    h_prev = jnp.asarray(x, jnp.float32)[jnp.asarray(unique_idx)]
    h = h_prev
    for i, (w_self, w_neigh, b) in enumerate(params[:limit]):
        neighs = loader.neighbors(nodes_u, n_neighbors[i])
        neigh_feats = loader.get_feats(neighs).astype(jnp.float32)   # [U, K, F]
        if i == 1:
            nf = _reference_forward(params, loader, n_neighbors,
                                    loader.get_feats(neighs.reshape(-1)),
                                    neighs.reshape(-1), limit=1)
            neigh_feats = nf.reshape(len(nodes_u), n_neighbors[i], -1)
        mean = jnp.mean(neigh_feats, axis=1)
        w_cat = jnp.concatenate([w_self, w_neigh], axis=0)
        h = jax.nn.relu(jnp.concatenate([h_prev, mean], -1) @ w_cat + b)
        h_prev = h
    return h[jnp.asarray(unique_reverse)]


# --------------------------------- main ------------------------------------ #
if __name__ == "__main__":
    key = jax.random.PRNGKey(0)
    k_loader, k_params, k_nodes = jax.random.split(key, 3)

    layer_sizes = [32, 32, 16]          # feat -> hidden -> out
    n_neighbors = [3, 4]
    total_nodes = 64
    batch = 16

    loader = SyntheticLoader(k_loader, total_nodes, layer_sizes[0],
                             max_neighbors=max(n_neighbors))
    params = init_params(k_params, layer_sizes, concat=True)

    nodes = np.array(
        jax.random.randint(k_nodes, (batch,), 0, total_nodes), dtype=np.int32)
    x = loader.get_feats(nodes)                                # [batch, 32] bf16

    out = graphsage_forward(params, loader, n_neighbors, x, nodes)
    out = jax.block_until_ready(out)
    assert out.shape == (batch, layer_sizes[-1])

    # loose tolerance: kernel runs bf16 operands / bf16 writeback vs f32 reference
    ref = jax.block_until_ready(
        _reference_forward(params, loader, n_neighbors, x, nodes))
    np.testing.assert_allclose(np.asarray(out), np.asarray(ref),
                               atol=0.1, rtol=0.1)
    print("KERNEL_OK")
</pallas_src>

<mosaic_0001>
module attributes {stable_mosaic.version = 11 : i64} {
  func.func @sage_layer_kernel(%arg0: i32, %arg1: memref<16x32xbf16, #tpu.memory_space<vmem>>, %arg2: memref<3x16x32xbf16, #tpu.memory_space<vmem>>, %arg3: memref<64x128xbf16, #tpu.memory_space<vmem>>, %arg4: memref<1x128xf32, #tpu.memory_space<vmem>>, %arg5: memref<16x128xbf16, #tpu.memory_space<vmem>>) attributes {dimension_semantics = [#tpu.dimension_semantics<parallel>], iteration_bounds = array<i64: 2>, scalar_prefetch = 0 : i64, scratch_operands = 0 : i64, tpu.core_type = #tpu.core_type<tc>, window_params = [{transform_indices = @transform_0, window_bounds = array<i64: 16, 32>}, {transform_indices = @transform_1, window_bounds = array<i64: 3, 16, 32>}, {pipeline_mode = #tpu.pipeline_mode<synchronous>, transform_indices = @transform_2, window_bounds = array<i64: 64, 128>}, {pipeline_mode = #tpu.pipeline_mode<synchronous>, transform_indices = @transform_3, window_bounds = array<i64: 1, 128>}, {transform_indices = @transform_4, window_bounds = array<i64: 16, 128>}]} {
    %c0 = arith.constant 0 : index
    %c0_0 = arith.constant 0 : index
    %c0_1 = arith.constant 0 : index
    %0 = vector.load %arg2[%c0, %c0_0, %c0_1] : memref<3x16x32xbf16, #tpu.memory_space<vmem>>, vector<3x16x32xbf16>
    %1 = arith.extf %0 : vector<3x16x32xbf16> to vector<3x16x32xf32>
    %cst = arith.constant dense<0.000000e+00> : vector<16x32xf32>
    %2 = vector.multi_reduction <add>, %1, %cst [0] : vector<3x16x32xf32> to vector<16x32xf32>
    %c0_2 = arith.constant 0 : index
    %c0_3 = arith.constant 0 : index
    %3 = vector.load %arg1[%c0_2, %c0_3] : memref<16x32xbf16, #tpu.memory_space<vmem>>, vector<16x32xbf16>
    %4 = arith.truncf %2 : vector<16x32xf32> to vector<16x32xbf16>
    %5 = tpu.concatenate %3, %4 in 1 : vector<16x32xbf16>, vector<16x32xbf16> -> vector<16x64xbf16>
    %c0_4 = arith.constant 0 : index
    %c0_5 = arith.constant 0 : index
    %6 = vector.load %arg3[%c0_4, %c0_5] : memref<64x128xbf16, #tpu.memory_space<vmem>>, vector<64x128xbf16>
    %cst_6 = arith.constant dense<0.000000e+00> : vector<16x128xf32>
    %7 = tpu.matmul %5, %6, %cst_6 {dimension_numbers = #tpu.dot_dimension_numbers<[1], [0], [0], [1], [0, 0, 1, 1], [], []>} : vector<16x64xbf16>, vector<64x128xbf16>, vector<16x128xf32> -> vector<16x128xf32>
    %c0_7 = arith.constant 0 : index
    %c0_8 = arith.constant 0 : index
    %8 = vector.load %arg4[%c0_7, %c0_8] : memref<1x128xf32, #tpu.memory_space<vmem>>, vector<1x128xf32>
    %9 = vector.broadcast %8 : vector<1x128xf32> to vector<16x128xf32>
    %10 = arith.addf %7, %9 : vector<16x128xf32>
    %cst_9 = arith.constant 0.000000e+00 : f32
    %11 = vector.broadcast %cst_9 : f32 to vector<16x128xf32>
    %12 = arith.maximumf %10, %11 : vector<16x128xf32>
    %13 = arith.truncf %12 : vector<16x128xf32> to vector<16x128xbf16>
    %c0_10 = arith.constant 0 : index
    %c0_11 = arith.constant 0 : index
    %14 = vector.load %arg5[%c0_10, %c0_11] : memref<16x128xbf16, #tpu.memory_space<vmem>>, vector<16x128xbf16>
    tpu.vector_store %arg5[%c0_10, %c0_11], %13 {strides = array<i32>} : memref<16x128xbf16, #tpu.memory_space<vmem>>, vector<16x128xbf16>,
    return
  }
  func.func @transform_0(%arg0: i32) -> (i32, i32) {
    %c0_i32 = arith.constant 0 : i32
    %c0_i32_0 = arith.constant 0 : i32
    return %arg0, %c0_i32 : i32, i32
  }
  func.func @transform_1(%arg0: i32) -> (i32, i32, i32) {
    %c0_i32 = arith.constant 0 : i32
    %c0_i32_0 = arith.constant 0 : i32
    %c0_i32_1 = arith.constant 0 : i32
    return %c0_i32, %arg0, %c0_i32_0 : i32, i32, i32
  }
  func.func @transform_2(%arg0: i32) -> (i32, i32) {
    %c0_i32 = arith.constant 0 : i32
    %c0_i32_0 = arith.constant 0 : i32
    %c0_i32_1 = arith.constant 0 : i32
    return %c0_i32, %c0_i32_0 : i32, i32
  }
  func.func @transform_3(%arg0: i32) -> (i32, i32) {
    %c0_i32 = arith.constant 0 : i32
    %c0_i32_0 = arith.constant 0 : i32
    %c0_i32_1 = arith.constant 0 : i32
    return %c0_i32, %c0_i32_0 : i32, i32
  }
  func.func @transform_4(%arg0: i32) -> (i32, i32) {
    %c0_i32 = arith.constant 0 : i32
    %c0_i32_0 = arith.constant 0 : i32
    return %arg0, %c0_i32 : i32, i32
  }
}

</mosaic_0001>

<bundles_post_ra>
// kernel: sage_layer.1
= control target key start
LH: loop header
LB: loop body
LE: loop exit
PB: predicated region body
PF: predicated region fallthrough
CT: control target
= control target key end

     0   :  { %9 = vsyncpa [#allocation4], 0  ;;  %s855_s0 = inlined_call_operand.vmem [shape: bf16[32,32], index: 0, kind: input, shape index: {}]   ;;  %s856_s1 = inlined_call_operand.vmem [shape: bf16[3,32,32], index: 1, kind: input, shape index: {}]   ;;  %s857_s2 = inlined_call_operand.vmem [shape: bf16[64,128], index: 2, kind: input, shape index: {}]   ;;  %s858_s3 = inlined_call_operand.vmem [shape: f32[1,128], index: 3, kind: input, shape index: {}]   ;;  %s859_s4 = inlined_call_operand.hbm [shape: bf16[32,128], index: 4, kind: output, shape index: {}]  }
   0x1   :  { %11 = vsyncpa [#allocation4 + $0x1], 0  ;;  %s718_s15 = smov 0   ;;  %s720_s16 = smov 0  }
   0x2   :  { %s722_s17 = smov 0   ;;  %s724_s18 = smov 0  }
   0x3 LB: > { %s739_s19 = sadd.s32 4294967295, %s685_s18   ;;  %s511_s20 = sadd.s32 4294967294, %s685_s18   ;;  %s685_s18 = sphi %s724_s18, %s865_s18   ;;  %s681_s17 = sphi %s722_s17, %s864_s17   ;;  %s677_s16 = sphi %s720_s16, %s863_s16   ;;  %s673_s15 = sphi %s718_s15, %s862_s15  }
   0x4   : > { %s743_s21 = sadd.s32 1, %s685_s18   ;;  %s50_s22 = sadd.s32 1, %s681_s17 }
   0x5   : > { %s47_s23 = ssub.s32 %s685_s18, %s743_s21  ;;  %p57_p0 = scmp.ne.s32.totalorder %s681_s17, %s677_s16 }
   0x6   : > { %p48_p1 = scmp.eq.s32.totalorder %s47_s23, 0  ;;  %p58_p2 = scmp.eq.s32.totalorder %s685_s18, 0 }
   0x7   : > { %p129_p3 = scmp.eq.s32.totalorder %s739_s19, 1  ;;  %p134_p4 = scmp.ne.s32.totalorder %s677_s16, %s673_s15 }
   0x8   : > { %s755_s24 = scalar_select %p48_p1, %s681_s17, %s50_s22  }
   0x9   : > { %p59_p5 = por %p58_p2, %p57_p0  ;;  %p757_p6 = por %p129_p3, %p57_p0 }
   0xa   : > { %p135_p7 = scmp.eq.s32.totalorder %s511_s20, 1  ;;  %p513_p9 = scmp.ge.s32.totalorder %s685_s18, 2 }
   0xc   : > { %p761_p8 = por %p135_p7, %p134_p4  ;;  %157 = sbr.rel (%p513_p9) target bundleno = 23 (0x17), region = 24 }
  0x11   : > { %169 = sbr.rel (!%p59_p5) target bundleno = 23 (0x17), region = 32  ;;  %s171_s27 = sand.u32 (%p59_p5), 1, %s681_s17  }
  0x12   : > { %s534_s28 = sshll.u32 (%p59_p5), %s685_s18, 3  ;;  %s574_s29 = smul.u32 (%p59_p5), 24, %s171_s27 }
  0x13   : > { %s176_s6 = scalar_lea.vmem (%p59_p5), %s856_s1, %s534_s28 }
  0x14   : > { %v193_v0 = vld [vmem:[%s176_s6] sm:$0xff] (%p59_p5)   ;;  %v197_v1 = vld [vmem:[%s176_s6 + $0x10] sm:$0xff] (%p59_p5)   ;;  %s173_s7 = scalar_lea.vmem (%p59_p5), [#allocation2], %s574_s29 }
  0x15   : > { %v201_v2 = vld [vmem:[%s176_s6 + $0x20] sm:$0xff] (%p59_p5)   ;;  %194 = vst [vmem:[%s173_s7] sm:$0xff] (%p59_p5), %v193_v0   ;;  %198 = vst [vmem:[%s173_s7 + $0x8] sm:$0xff] (%p59_p5), %v197_v1  }
  0x16   : > { %202 = vst [vmem:[%s173_s7 + $0x10] sm:$0xff] %v201_v2  }
  0x17 PF: > { %p516_p10 = scmp.ge.s32.totalorder %s685_s18, 1  ;;  %p239_p11 = scmp.lt.s32.totalorder %s685_s18, 3 }
  0x19   : > { %p240_p12 = pnand %p516_p10, %p239_p11 }
  0x1a   : > { %s776_s8 = sand.u32 (!%p240_p12), 1, %s677_s16   ;;  %s518_s12 = sshll.u32 (!%p240_p12), %s739_s19, 1 }
  0x1b   : > { %243 = sbr.rel (%p240_p12) target bundleno = 376 (0x178), region = 73  ;;  %p277_p13 = scmp.lt.s32.totalorder (!%p240_p12), %s518_s12, 3 }
  0x1c   : > { %s575_s9 = smul.u32 (!%p240_p12), 24, %s776_s8  ;;  %s689_s7 = smov (!%p240_p12), 32  }
  0x1d   : > { %s537_s14 = sshll.u32 (!%p240_p12), %s739_s19, 7  ;;  %s690_s19 = smov (!%p240_p12), [#allocation3]  }
  0x1e   : > { %s248_s20 = scalar_lea.vmem (!%p240_p12), [#allocation2], %s575_s9  ;;  %s517_s9 = sshll.u32 (!%p240_p12), %s776_s8, 3 }
  0x1f   : > { %s812_s23 = scalar_lea.hbm (!%p240_p12), %s859_s4, %s537_s14  ;;  %s629_s29 = sshll.u32 (!%p240_p12), %s690_s19, 4  ;;  %s630_s29 = int_to_ptr.vmem [resolvable:$false] %s629_s29 }
  0x20   : > { %v687_v3 = vmov 0.0   ;;  %v620_v4 = vld [vmem:[%s857_s2 + $0x18] sm:$0xff]   ;;  %v621_v5 = vld [vmem:[%s857_s2 + $0x10] sm:$0xff]   ;;  %v555_v7 = vld [vmem:[%s248_s20 + $0x8] sm:$0xff]   ;;  %vm297_vm0 = vcmask 261120   ;;  %vm688_vm1 = vmmov 0  }
  0x21   : > { %562 = vmatprep.subr.bf16.mxu0 %v687_v3  ;;  %v539_v6 = vld [vmem:[%s248_s20] sm:$0xff]   ;;  %v556_v8 = vld [vmem:[%s248_s20 + $0x10] sm:$0xff]   ;;  %v544_v11 = vunpack.c.l.bf16 %v555_v7  ;;  %v545_v12 = vunpack.c.h.bf16 %v555_v7  ;;  %570 = vmatprep.mubr.msk.bf16.mxu0 %vm688_vm1, %v687_v3  ;;  %s867_s12 = smov (!%p277_p13, %s518_s12), 3  ;;  %vm361_vm2 = vcmask 523264  }
  0x22   : > { %563 = vmatpush3.bf16.msra.mxu0 %v620_v4  ;;  %v540_v9 = vunpack.c.l.bf16 %v539_v6  ;;  %v541_v10 = vunpack.c.h.bf16 %v539_v6  ;;  %v548_v13 = vunpack.c.l.bf16 %v556_v8  ;;  %v549_v14 = vunpack.c.h.bf16 %v556_v8  ;;  %v622_v19 = vld [vmem:[%s857_s2 + $0x8] sm:$0xff]   ;;  %s519_s27 = sshll.u32 %s867_s12, 2  ;;  %v623_v26 = vld [vmem:[%s857_s2] sm:$0xff]   ;;  %s275_s12 = scalar_lea.vmem [#allocation3], %s517_s9 }
  0x23   : > { %564 = vmatprep.subr.bf16.mxu0 %v687_v3  ;;  %v299_v16 = vsel %vm297_vm0, %v544_v11, 0.0  ;;  %v304_v18 = vsel %vm297_vm0, %v545_v12, 0.0  ;;  %s280_s30 = scalar_lea.vmem %s855_s0, %s519_s27  ;;  %v521_v31 = vld [vmem:[%s858_s3] ss:$0 sm:$0xff]  ;;  %s431_s13 = sshll.u32 %s275_s12, 4  ;;  %s807_s13 = int_to_ptr.vmem [resolvable:$true] %s431_s13 }
  0x24   : > { %v298_v15 = vsel %vm297_vm0, %v540_v9, 0.0  ;;  %v303_v17 = vsel %vm297_vm0, %v541_v10, 0.0  ;;  %v301_v21 = vsel %vm297_vm0, %v548_v13, 0.0  ;;  %v306_v23 = vsel %vm297_vm0, %v549_v14, 0.0  ;;  %v624_v28 = vld [vmem:[%s280_s30] sm:$0xff]   ;;  %s418_s27 = scalar_lea.sflag [#allocation4], %s776_s8  ;;  %p632_p3 = scmp.lt.s32.totalorder %s807_s13, %s630_s29 }
  0x25   : > { %v300_v20 = vadd.f32 %v299_v16, %v298_v15  ;;  %v305_v22 = vadd.f32 %v304_v18, %v303_v17  ;;  %s625_s28 = scalar_lea.vmem %s807_s13, 128  ;;  %s631_s30 = scalar_lea.vmem %s630_s29, 256 }
  0x26   : > { %565 = vmatpush3.bf16.msra.mxu0 %v621_v5  ;;  %p626_p0 = scmp.ne.s32.totalorder %s807_s13, %s625_s28  ;;  %p633_p4 = scmp.lt.s32.totalorder %s631_s30, %s625_s28 }
  0x27   : > { %566 = vmatprep.subr.bf16.mxu0 %v687_v3  ;;  %v302_v24 = vadd.f32 %v301_v21, %v300_v20  ;;  %v307_v25 = vadd.f32 %v306_v23, %v305_v22 }
  0x28   : > { %p627_p1 = pnand %p626_p0, %p757_p6  ;;  %p634_p5 = por %p633_p4, %p632_p3 }
  0x29   : > { %v310_v27 = vpack.c.bf16 %v307_v25, %v302_v24 }
  0x2a   : > { %567 = vmatpush3.bf16.msra.mxu0 %v622_v19  ;;  %p628_p2 = pneg %p627_p1 }
  0x2b   : > { %568 = vmatprep.subr.bf16.mxu0 %v687_v3  ;;  %317 = vrot.lane.b32.xlu0 %v310_v27, %s689_s7 }
  0x2c   : > { %p635_p7 = pnand %p634_p5, %p628_p2 }
  0x2e   : > { %569 = vmatpush3.bf16.msra.mxu0 %v623_v26 }
  0x9d   : > { %v318_v29 = vpop.permute.xlu0 %317 }
  0x9e   : > { %v321_v30 = vsel %vm297_vm0, %v624_v28, %v318_v29 }
  0x9f   : > { %571 = vmatmul.mubr.msk.bf16.vlgmr.msra.gmra.mxu0 %vm361_vm2, %v321_v30 }
 0x15f   : > { %v398_v32 = vpop.f32.mrf.mxu0 }
 0x160   : > { %v399_v34 = vadd.f32 %v521_v31, %v398_v32 }
 0x161   : > { %v572_v33 = vpop.f32.mrf.mxu0 }
 0x162   : > { %v405_v38 = vmax.f32 %v399_v34, 0.0 }
 0x163   : > { %v401_v35 = vpop.f32.mrf.mxu0 }
 0x164   : > { %v402_v36 = vadd.f32 %v521_v31, %v401_v35 }
 0x165   : > { %v573_v37 = vpop.f32.mrf.mxu0 }
 0x166   : > { %v406_v39 = vmax.f32 %v402_v36, 0.0 }
 0x168   : > { %v553_v40 = vpack.c.bf16 %v406_v39, %v405_v38 }
 0x16a   : > { %554 = vst [vmem:[%s275_s12] sm:$0xff] %v553_v40  }
 0x16b   : > { %638 = shalt.err (!%p635_p7)
}
 0x16c   : > { %s639_s5 = scalar_lea.hbm %s812_s23, 128  ;;  %s643_s9 = scalar_lea.hbm %s859_s4, 256 }
 0x16d   : > { %p640_p10 = scmp.ne.s32.totalorder %s812_s23, %s639_s5  ;;  %p644_p13 = scmp.lt.s32.totalorder %s812_s23, %s859_s4 }
 0x16e   : > { %p645_p0 = scmp.lt.s32.totalorder %s643_s9, %s639_s5 }
 0x16f   : > { %p641_p11 = pnand %p640_p10, %p757_p6 }
 0x170   : > { %p646_p1 = por %p645_p0, %p644_p13 }
 0x171   : > { %p642_p12 = pneg %p641_p11 }
 0x173   : > { %p647_p2 = pnand %p646_p1, %p642_p12 }
 0x175   : > { %650 = shalt.err (!%p647_p2)
}
 0x176   : > { %s691_s12 = smov 64   ;;  %s692_s14 = smov 4  }
 0x177   : > { %576 = dma.vmem_to_hbm [thread:$0]  (%p757_p6), %s807_s13, 128, %s812_s23, %s418_s27, %s691_s12, %s691_s12, %s692_s14  }
 0x178 PF: > { %s446_s20 = sand.u32 1, %s673_s15   ;;  %p579_p3 = pnand %p513_p9, %p761_p8 }
 0x179   : > { %s447_s22 = scalar_lea.sflag [#allocation4], %s446_s20 }
 0x17a   : > { %p580_p4 = pneg %p579_p3 }
 0x17c   : > { %668 = dma.done.wait (%p580_p4), %s447_s22, 128  }
 0x17d   : > { %670 = vsyncadd (%p580_p4), %s447_s22, 4294967168  ;;  %p14_p5 = scmp.ge.s32.totalorder %s743_s21, 4   ;;  %s862_s15 = smov %s677_s16 }
 0x17e   : > { %s863_s16 = smov %s681_s17  ;;  %s864_s17 = smov %s755_s24 }
 0x17f   : > { %s865_s18 = smov %s743_s21  ;;  %16 = sbr.rel (!%p14_p5) target bundleno = 3 (0x3), region = 120 }
 0x184   :  { %452 = vsyncpa [#allocation4], 1 }
 0x185   :  { %454 = vsyncpa [#allocation4 + $0x1], 1 }

</bundles_post_ra>
